<compile_context>
chip_gen: v6e
topology: v6e:2x2x1
jax: 0.10.0
libtpu: 0.0.40
codegen_flags: <defaults>
</compile_context>

<pallas_src>
import math

import jax
import jax.numpy as jnp
from jax import lax
from jax.experimental import pallas as pl
from jax.experimental.pallas import tpu as pltpu

D_MODEL = 32
D_HIDDEN = 4 * D_MODEL
LN_EPS = 1e-5
_INV_SQRT2 = 1.0 / math.sqrt(2.0)
_MAX_TM = 512  # rows per grid step; multiple of 8, comfortably inside VMEM


def _erf(z):
    """Abramowitz & Stegun 7.1.26 erf approximation (|err| < 1.5e-7).

    Only exp + polynomial/select ops, so it lowers on every TPU generation.
    The divide is done as EUP approx-reciprocal + one Newton step (f32-level
    accuracy, VALU slot stays free of a true divide).
    """
    a1, a2, a3, a4, a5 = (0.254829592, -0.284496736, 1.421413741,
                          -1.453152027, 1.061405429)
    p = 0.3275911
    az = jnp.abs(z)
    d = 1.0 + p * az
    t0 = pl.reciprocal(d, approx=True)       # EUP vrcp
    t = t0 * (2.0 - d * t0)                  # one NR refinement -> ~1 ulp f32
    poly = ((((a5 * t + a4) * t + a3) * t + a2) * t + a1) * t
    y = 1.0 - poly * jnp.exp(-az * az)
    return jnp.where(z >= 0.0, y, -y)


def _gelu_exact(h):
    # nn.GELU() default (approximate='none'): 0.5 * x * (1 + erf(x / sqrt(2)))
    return 0.5 * h * (1.0 + _erf(h * _INV_SQRT2))


def _ffn_kernel(x_ref, w1_ref, w2_ref, vec_ref, o_ref):
    x = x_ref[...].astype(jnp.float32)                        # (TM, D)

    # Packed small-vector slab: row 0 = b1 (4D), rows 1..3 = b2/gamma/beta (D).
    b1 = vec_ref[0:1, :]                                       # (1, 4D)
    b2 = vec_ref[1:2, 0:D_MODEL]                               # (1, D)
    gamma = vec_ref[2:3, 0:D_MODEL]                            # (1, D)
    beta = vec_ref[3:4, 0:D_MODEL]                             # (1, D)

    # Linear 1: (TM, D) @ (D, 4D) + b1 — hidden last dim 128 is lane-dense.
    h = jnp.dot(x, w1_ref[...], preferred_element_type=jnp.float32) + b1
    h = _gelu_exact(h)

    # Linear 2: (TM, 4D) @ (4D, D) + b2
    y = jnp.dot(h, w2_ref[...], preferred_element_type=jnp.float32) + b2

    # Residual (dropout = identity) + LayerNorm over last dim (two-pass stats).
    r = x + y
    inv_d = 1.0 / r.shape[-1]
    mean = jnp.sum(r, axis=-1, keepdims=True) * inv_d
    c = r - mean
    var = jnp.sum(c * c, axis=-1, keepdims=True) * inv_d
    rn = c * lax.rsqrt(var + LN_EPS)

    o_ref[...] = (rn * gamma + beta).astype(o_ref.dtype)


def prepare_params(params):
    """One-time parameter prep (call at init, NOT in the per-forward path).

    Pre-transposes the PyTorch-layout weights (y = x @ W^T + b  ->  x @ Wt + b)
    and packs b1/b2/gamma/beta into a single zero-padded (4, 4D) f32 slab.
    """
    w1_t = jnp.asarray(params["w1"], jnp.float32).T            # (D, 4D)
    w2_t = jnp.asarray(params["w2"], jnp.float32).T            # (4D, D)
    vec = jnp.zeros((4, D_HIDDEN), jnp.float32)
    vec = vec.at[0, :].set(jnp.asarray(params["b1"], jnp.float32))
    vec = vec.at[1, :D_MODEL].set(jnp.asarray(params["b2"], jnp.float32))
    vec = vec.at[2, :D_MODEL].set(jnp.asarray(params["ln_weight"], jnp.float32))
    vec = vec.at[3, :D_MODEL].set(jnp.asarray(params["ln_bias"], jnp.float32))
    return {"w1_t": w1_t, "w2_t": w2_t, "vec": vec}


@jax.jit
def feed_forward(x, kparams):
    """x: [B, T, D] float32.  kparams: output of prepare_params()."""
    B, T, D = x.shape
    assert D == D_MODEL
    BT = B * T
    x2 = x.reshape(BT, D)

    # Row tile: multiple of 8 sublanes, as large as useful (cap 512). At the
    # demo size this is a single grid step.
    tm = min(_MAX_TM, max(8, ((BT + 7) // 8) * 8))
    bt_pad = pl.cdiv(BT, tm) * tm
    if bt_pad != BT:
        x2 = jnp.pad(x2, ((0, bt_pad - BT), (0, 0)))

    out = pl.pallas_call(
        _ffn_kernel,
        out_shape=jax.ShapeDtypeStruct((bt_pad, D), x.dtype),
        grid_spec=pltpu.PrefetchScalarGridSpec(
            num_scalar_prefetch=0,
            grid=(bt_pad // tm,),
            in_specs=[
                pl.BlockSpec((tm, D), lambda i: (i, 0)),          # x rows
                pl.BlockSpec((D, D_HIDDEN), lambda i: (0, 0)),    # W1^T resident
                pl.BlockSpec((D_HIDDEN, D), lambda i: (0, 0)),    # W2^T resident
                pl.BlockSpec((4, D_HIDDEN), lambda i: (0, 0)),    # packed vectors
            ],
            out_specs=pl.BlockSpec((tm, D), lambda i: (i, 0)),
        ),
        compiler_params=pltpu.CompilerParams(
            dimension_semantics=("parallel",),   # shards rows over v7x's 2 TCs
        ),
    )(x2, kparams["w1_t"], kparams["w2_t"], kparams["vec"])

    if bt_pad != BT:
        out = out[:BT]
    return out.reshape(B, T, D)


def _reference(x, params):
    """Pure-JAX reference matching the PyTorch FeedForward module (eval mode)."""
    h = x @ params["w1"].T + params["b1"]
    h = jax.nn.gelu(h, approximate=False)          # exact erf GELU == nn.GELU()
    y = h @ params["w2"].T + params["b2"]
    r = x + y
    mean = jnp.mean(r, axis=-1, keepdims=True)
    var = jnp.mean((r - mean) ** 2, axis=-1, keepdims=True)
    return ((r - mean) * lax.rsqrt(var + LN_EPS) * params["ln_weight"]
            + params["ln_bias"])


if __name__ == "__main__":
    key = jax.random.PRNGKey(0)
    k_x, k_w1, k_b1, k_w2, k_b2 = jax.random.split(key, 5)

    B, T = 2, 8
    x = jax.random.normal(k_x, (B, T, D_MODEL), dtype=jnp.float32)

    params = {
        "w1": 0.1 * jax.random.normal(k_w1, (D_HIDDEN, D_MODEL), jnp.float32),
        "b1": 0.05 * jax.random.normal(k_b1, (D_HIDDEN,), jnp.float32),
        "w2": 0.1 * jax.random.normal(k_w2, (D_MODEL, D_HIDDEN), jnp.float32),
        "b2": 0.05 * jax.random.normal(k_b2, (D_MODEL,), jnp.float32),
        "ln_weight": jnp.ones((D_MODEL,), jnp.float32),
        "ln_bias": jnp.zeros((D_MODEL,), jnp.float32),
    }

    kparams = prepare_params(params)               # one-time: transpose + pack
    out = jax.block_until_ready(feed_forward(x, kparams))
    ref = _reference(x, params)

    assert out.shape == (B, T, D_MODEL)
    assert jnp.allclose(out, ref, atol=1e-4, rtol=1e-4), "mismatch vs reference"

    print("KERNEL_OK")
</pallas_src>

<mosaic_0001>
module attributes {stable_mosaic.version = 11 : i64} {
  func.func @_ffn_kernel(%arg0: i32, %arg1: memref<16x32xf32, #tpu.memory_space<vmem>>, %arg2: memref<32x128xf32, #tpu.memory_space<vmem>>, %arg3: memref<128x32xf32, #tpu.memory_space<vmem>>, %arg4: memref<4x128xf32, #tpu.memory_space<vmem>>, %arg5: memref<16x32xf32, #tpu.memory_space<vmem>>) attributes {dimension_semantics = [#tpu.dimension_semantics<parallel>], iteration_bounds = array<i64: 1>, scalar_prefetch = 0 : i64, scratch_operands = 0 : i64, tpu.core_type = #tpu.core_type<tc>, window_params = [{transform_indices = @transform_0, window_bounds = array<i64: 16, 32>}, {pipeline_mode = #tpu.pipeline_mode<synchronous>, transform_indices = @transform_1, window_bounds = array<i64: 32, 128>}, {pipeline_mode = #tpu.pipeline_mode<synchronous>, transform_indices = @transform_2, window_bounds = array<i64: 128, 32>}, {pipeline_mode = #tpu.pipeline_mode<synchronous>, transform_indices = @transform_3, window_bounds = array<i64: 4, 128>}, {transform_indices = @transform_4, window_bounds = array<i64: 16, 32>}]} {
    %c0 = arith.constant 0 : index
    %c0_0 = arith.constant 0 : index
    %0 = vector.load %arg1[%c0, %c0_0] : memref<16x32xf32, #tpu.memory_space<vmem>>, vector<16x32xf32>
    %c0_1 = arith.constant 0 : index
    %c0_2 = arith.constant 0 : index
    %1 = vector.load %arg4[%c0_1, %c0_2] : memref<4x128xf32, #tpu.memory_space<vmem>>, vector<1x128xf32>
    %c1 = arith.constant 1 : index
    %c0_3 = arith.constant 0 : index
    %2 = vector.load %arg4[%c1, %c0_3] : memref<4x128xf32, #tpu.memory_space<vmem>>, vector<1x32xf32>
    %c2 = arith.constant 2 : index
    %c0_4 = arith.constant 0 : index
    %3 = vector.load %arg4[%c2, %c0_4] : memref<4x128xf32, #tpu.memory_space<vmem>>, vector<1x32xf32>
    %c3 = arith.constant 3 : index
    %c0_5 = arith.constant 0 : index
    %4 = vector.load %arg4[%c3, %c0_5] : memref<4x128xf32, #tpu.memory_space<vmem>>, vector<1x32xf32>
    %c0_6 = arith.constant 0 : index
    %c0_7 = arith.constant 0 : index
    %5 = vector.load %arg2[%c0_6, %c0_7] : memref<32x128xf32, #tpu.memory_space<vmem>>, vector<32x128xf32>
    %cst = arith.constant dense<0.000000e+00> : vector<16x128xf32>
    %6 = tpu.matmul %0, %5, %cst {dimension_numbers = #tpu.dot_dimension_numbers<[1], [0], [0], [1], [0, 0, 1, 1], [], []>} : vector<16x32xf32>, vector<32x128xf32>, vector<16x128xf32> -> vector<16x128xf32>
    %7 = vector.broadcast %1 : vector<1x128xf32> to vector<16x128xf32>
    %8 = arith.addf %6, %7 : vector<16x128xf32>
    %cst_8 = arith.constant 5.000000e-01 : f32
    %9 = vector.broadcast %cst_8 : f32 to vector<16x128xf32>
    %10 = arith.mulf %9, %8 : vector<16x128xf32>
    %cst_9 = arith.constant 0.707106769 : f32
    %11 = vector.broadcast %cst_9 : f32 to vector<16x128xf32>
    %12 = arith.mulf %8, %11 : vector<16x128xf32>
    %13 = math.absf %12 : vector<16x128xf32>
    %cst_10 = arith.constant 0.327591091 : f32
    %14 = vector.broadcast %cst_10 : f32 to vector<16x128xf32>
    %15 = arith.mulf %14, %13 : vector<16x128xf32>
    %cst_11 = arith.constant 1.000000e+00 : f32
    %16 = vector.broadcast %cst_11 : f32 to vector<16x128xf32>
    %17 = arith.addf %16, %15 : vector<16x128xf32>
    %18 = tpu.reciprocal %17 {approx = true} : vector<16x128xf32> -> vector<16x128xf32>
    %19 = arith.mulf %17, %18 : vector<16x128xf32>
    %cst_12 = arith.constant 2.000000e+00 : f32
    %20 = vector.broadcast %cst_12 : f32 to vector<16x128xf32>
    %21 = arith.subf %20, %19 : vector<16x128xf32>
    %22 = arith.mulf %18, %21 : vector<16x128xf32>
    %cst_13 = arith.constant 1.06140542 : f32
    %23 = vector.broadcast %cst_13 : f32 to vector<16x128xf32>
    %24 = arith.mulf %23, %22 : vector<16x128xf32>
    %cst_14 = arith.constant -1.45315206 : f32
    %25 = vector.broadcast %cst_14 : f32 to vector<16x128xf32>
    %26 = arith.addf %24, %25 : vector<16x128xf32>
    %27 = arith.mulf %26, %22 : vector<16x128xf32>
    %cst_15 = arith.constant 1.42141378 : f32
    %28 = vector.broadcast %cst_15 : f32 to vector<16x128xf32>
    %29 = arith.addf %27, %28 : vector<16x128xf32>
    %30 = arith.mulf %29, %22 : vector<16x128xf32>
    %cst_16 = arith.constant -0.284496725 : f32
    %31 = vector.broadcast %cst_16 : f32 to vector<16x128xf32>
    %32 = arith.addf %30, %31 : vector<16x128xf32>
    %33 = arith.mulf %32, %22 : vector<16x128xf32>
    %cst_17 = arith.constant 0.254829586 : f32
    %34 = vector.broadcast %cst_17 : f32 to vector<16x128xf32>
    %35 = arith.addf %33, %34 : vector<16x128xf32>
    %36 = arith.mulf %35, %22 : vector<16x128xf32>
    %cst_18 = arith.constant 0.000000e+00 : f32
    %37 = vector.broadcast %cst_18 : f32 to vector<16x128xf32>
    %38 = arith.subf %37, %13 : vector<16x128xf32>
    %39 = arith.mulf %38, %13 : vector<16x128xf32>
    %40 = math.exp %39 : vector<16x128xf32>
    %41 = arith.mulf %36, %40 : vector<16x128xf32>
    %cst_19 = arith.constant 1.000000e+00 : f32
    %42 = vector.broadcast %cst_19 : f32 to vector<16x128xf32>
    %43 = arith.subf %42, %41 : vector<16x128xf32>
    %cst_20 = arith.constant 0.000000e+00 : f32
    %44 = vector.broadcast %cst_20 : f32 to vector<16x128xf32>
    %45 = arith.cmpf oge, %12, %44 : vector<16x128xf32>
    %cst_21 = arith.constant 0.000000e+00 : f32
    %46 = vector.broadcast %cst_21 : f32 to vector<16x128xf32>
    %47 = arith.subf %46, %43 : vector<16x128xf32>
    %48 = arith.select %45, %43, %47 : vector<16x128xi1>, vector<16x128xf32>
    %cst_22 = arith.constant 1.000000e+00 : f32
    %49 = vector.broadcast %cst_22 : f32 to vector<16x128xf32>
    %50 = arith.addf %49, %48 : vector<16x128xf32>
    %51 = arith.mulf %10, %50 : vector<16x128xf32>
    %c0_23 = arith.constant 0 : index
    %c0_24 = arith.constant 0 : index
    %52 = vector.load %arg3[%c0_23, %c0_24] : memref<128x32xf32, #tpu.memory_space<vmem>>, vector<128x32xf32>
    %cst_25 = arith.constant dense<0.000000e+00> : vector<16x32xf32>
    %53 = tpu.matmul %51, %52, %cst_25 {dimension_numbers = #tpu.dot_dimension_numbers<[1], [0], [0], [1], [0, 0, 1, 1], [], []>} : vector<16x128xf32>, vector<128x32xf32>, vector<16x32xf32> -> vector<16x32xf32>
    %54 = vector.broadcast %2 : vector<1x32xf32> to vector<16x32xf32>
    %55 = arith.addf %53, %54 : vector<16x32xf32>
    %56 = arith.addf %0, %55 : vector<16x32xf32>
    %cst_26 = arith.constant dense<0.000000e+00> : vector<16xf32>
    %57 = vector.multi_reduction <add>, %56, %cst_26 [1] : vector<16x32xf32> to vector<16xf32>
    %58 = vector.shape_cast %57 : vector<16xf32> to vector<16x1xf32>
    %cst_27 = arith.constant 3.125000e-02 : f32
    %59 = vector.broadcast %cst_27 : f32 to vector<16x1xf32>
    %60 = arith.mulf %58, %59 : vector<16x1xf32>
    %61 = vector.broadcast %60 : vector<16x1xf32> to vector<16x32xf32>
    %62 = arith.subf %56, %61 : vector<16x32xf32>
    %63 = arith.mulf %62, %62 : vector<16x32xf32>
    %cst_28 = arith.constant dense<0.000000e+00> : vector<16xf32>
    %64 = vector.multi_reduction <add>, %63, %cst_28 [1] : vector<16x32xf32> to vector<16xf32>
    %65 = vector.shape_cast %64 : vector<16xf32> to vector<16x1xf32>
    %cst_29 = arith.constant 3.125000e-02 : f32
    %66 = vector.broadcast %cst_29 : f32 to vector<16x1xf32>
    %67 = arith.mulf %65, %66 : vector<16x1xf32>
    %cst_30 = arith.constant 9.99999974E-6 : f32
    %68 = vector.broadcast %cst_30 : f32 to vector<16x1xf32>
    %69 = arith.addf %67, %68 : vector<16x1xf32>
    %70 = math.rsqrt %69 : vector<16x1xf32>
    %71 = vector.broadcast %70 : vector<16x1xf32> to vector<16x32xf32>
    %72 = arith.mulf %62, %71 : vector<16x32xf32>
    %73 = vector.broadcast %3 : vector<1x32xf32> to vector<16x32xf32>
    %74 = arith.mulf %72, %73 : vector<16x32xf32>
    %75 = vector.broadcast %4 : vector<1x32xf32> to vector<16x32xf32>
    %76 = arith.addf %74, %75 : vector<16x32xf32>
    %c0_31 = arith.constant 0 : index
    %c0_32 = arith.constant 0 : index
    %77 = vector.load %arg5[%c0_31, %c0_32] : memref<16x32xf32, #tpu.memory_space<vmem>>, vector<16x32xf32>
    tpu.vector_store %arg5[%c0_31, %c0_32], %76 {strides = array<i32>} : memref<16x32xf32, #tpu.memory_space<vmem>>, vector<16x32xf32>,
    return
  }
  func.func @transform_0(%arg0: i32) -> (i32, i32) {
    %c0_i32 = arith.constant 0 : i32
    %c0_i32_0 = arith.constant 0 : i32
    return %arg0, %c0_i32 : i32, i32
  }
  func.func @transform_1(%arg0: i32) -> (i32, i32) {
    %c0_i32 = arith.constant 0 : i32
    %c0_i32_0 = arith.constant 0 : i32
    %c0_i32_1 = arith.constant 0 : i32
    return %c0_i32, %c0_i32_0 : i32, i32
  }
  func.func @transform_2(%arg0: i32) -> (i32, i32) {
    %c0_i32 = arith.constant 0 : i32
    %c0_i32_0 = arith.constant 0 : i32
    %c0_i32_1 = arith.constant 0 : i32
    return %c0_i32, %c0_i32_0 : i32, i32
  }
  func.func @transform_3(%arg0: i32) -> (i32, i32) {
    %c0_i32 = arith.constant 0 : i32
    %c0_i32_0 = arith.constant 0 : i32
    %c0_i32_1 = arith.constant 0 : i32
    return %c0_i32, %c0_i32_0 : i32, i32
  }
  func.func @transform_4(%arg0: i32) -> (i32, i32) {
    %c0_i32 = arith.constant 0 : i32
    %c0_i32_0 = arith.constant 0 : i32
    return %arg0, %c0_i32 : i32, i32
  }
}

</mosaic_0001>

<bundles_post_ra>
// kernel: feed_forward.1
= control target key start
LH: loop header
LB: loop body
LE: loop exit
PB: predicated region body
PF: predicated region fallthrough
CT: control target
= control target key end

     0   :  { %vm32_vm0 = vcmask 261120   ;;  %s563_s0 = inlined_call_operand.vmem [shape: f32[16,32], index: 0, kind: input, shape index: {}]   ;;  %s564_s1 = inlined_call_operand.vmem [shape: f32[32,128], index: 1, kind: input, shape index: {}]   ;;  %s565_s2 = inlined_call_operand.vmem [shape: f32[128,32], index: 2, kind: input, shape index: {}]   ;;  %s566_s3 = inlined_call_operand.vmem [shape: f32[4,128], index: 3, kind: input, shape index: {}]   ;;  %s567_s4 = inlined_call_operand.hbm [shape: f32[16,32], index: 4, kind: output, shape index: {}]  }
   0x1   :  { %v27_v0 = vld [vmem:[%s564_s1 + $0x18] sm:$0xff]  ;;  %v26_v1 = vld [vmem:[%s564_s1 + $0x10] sm:$0xff]  ;;  %v475_v2 = vld [vmem:[%s563_s0] sm:$0xff] }
   0x2   :  { %355 = vmatprep.subr.mxu0 %v27_v0  ;;  %v25_v3 = vld [vmem:[%s564_s1 + $0x8] sm:$0xff]  ;;  %363 = vmatprep.mubr.msk.f32.mxu0 %vm32_vm0, %v475_v2 }
   0x3   :  { %356 = vmatpush3.msra.mxu0 %v27_v0 }
   0x4   :  { %9 = vsyncpa [#allocation3], 0  ;;  %357 = vmatprep.subr.mxu0 %v26_v1  ;;  %v24_v4 = vld [vmem:[%s564_s1] sm:$0xff]  ;;  %v488_v5 = vld [vmem:[%s563_s0 + $0x8] sm:$0xff]  ;;  %s438_s10 = smov [#allocation2]  }
   0x5   :  { %358 = vmatpush3.msra.mxu0 %v26_v1  ;;  %v187_v6 = vld [vmem:[%s565_s2 + $0x78] sm:$0xff]  ;;  %v186_v7 = vld [vmem:[%s565_s2 + $0x70] sm:$0xff]  ;;  %v185_v8 = vld [vmem:[%s565_s2 + $0x68] sm:$0xff]  ;;  %s314_s11 = sshll.u32 %s438_s10, 4  ;;  %s315_s11 = int_to_ptr.vmem [resolvable:$true] %s314_s11 }
   0x6   :  { %359 = vmatprep.subr.mxu0 %v25_v3  ;;  %366 = vmatprep.subr.mxu1 %v187_v6  ;;  %v184_v9 = vld [vmem:[%s565_s2 + $0x60] sm:$0xff]  ;;  %v183_v10 = vld [vmem:[%s565_s2 + $0x58] sm:$0xff]  ;;  %v182_v11 = vld [vmem:[%s565_s2 + $0x50] sm:$0xff]  ;;  %s416_s12 = scalar_lea.vmem %s315_s11, 256  ;;  %p421_p1 = scmp.lt.s32.totalorder %s315_s11, %s315_s11 }
   0x7   :  { %360 = vmatpush3.msra.mxu0 %v25_v3  ;;  %367 = vmatpush3.msra.mxu1 %v187_v6  ;;  %v181_v12 = vld [vmem:[%s565_s2 + $0x48] sm:$0xff]  ;;  %v180_v13 = vld [vmem:[%s565_s2 + $0x40] sm:$0xff]  ;;  %v179_v14 = vld [vmem:[%s565_s2 + $0x38] sm:$0xff]  ;;  %p417_p0 = scmp.ne.s32.totalorder %s315_s11, %s416_s12  ;;  %p422_p2 = scmp.lt.s32.totalorder %s416_s12, %s416_s12 }
   0x8   :  { %361 = vmatprep.subr.mxu0 %v24_v4  ;;  %368 = vmatprep.subr.mxu1 %v186_v7  ;;  %v178_v15 = vld [vmem:[%s565_s2 + $0x30] sm:$0xff]  ;;  %v177_v16 = vld [vmem:[%s565_s2 + $0x28] sm:$0xff]  ;;  %v176_v17 = vld [vmem:[%s565_s2 + $0x20] sm:$0xff] }
   0x9   :  { %362 = vmatpush3.msra.mxu0 %v24_v4  ;;  %369 = vmatpush3.msra.mxu1 %v186_v7  ;;  %v175_v18 = vld [vmem:[%s565_s2 + $0x18] sm:$0xff]  ;;  %v174_v19 = vld [vmem:[%s565_s2 + $0x10] sm:$0xff]  ;;  %v173_v20 = vld [vmem:[%s565_s2 + $0x8] sm:$0xff]  ;;  %p423_p3 = por %p422_p2, %p421_p1 }
   0xa   :  { %364 = vmatmul.mubr.msk.f32.vlgmr.msra.gmra.mxu0 %vm32_vm0, %v488_v5  ;;  %370 = vmatprep.subr.mxu1 %v185_v8  ;;  %v172_v21 = vld [vmem:[%s565_s2] sm:$0xff] }
   0xb   :  { %371 = vmatpush3.msra.mxu1 %v185_v8  ;;  %v325_v22 = vld [vmem:[%s566_s3] ss:$0 sm:$0xff]  ;;  %p424_p4 = pnand %p423_p3, %p417_p0 }
   0xc   :  { %372 = vmatprep.subr.mxu1 %v184_v9 }
   0xd   :  { %373 = vmatpush3.msra.mxu1 %v184_v9 }
   0xe   :  { %374 = vmatprep.subr.mxu1 %v183_v10 }
   0xf   :  { %375 = vmatpush3.msra.mxu1 %v183_v10 }
  0x10   :  { %376 = vmatprep.subr.mxu1 %v182_v11 }
  0x11   :  { %377 = vmatpush3.msra.mxu1 %v182_v11 }
  0x12   :  { %378 = vmatprep.subr.mxu1 %v181_v12 }
  0x13   :  { %379 = vmatpush3.msra.mxu1 %v181_v12 }
  0x14   :  { %380 = vmatprep.subr.mxu1 %v180_v13 }
  0x15   :  { %381 = vmatpush3.msra.mxu1 %v180_v13 }
  0x16   :  { %382 = vmatprep.subr.mxu1 %v179_v14 }
  0x17   :  { %383 = vmatpush3.msra.mxu1 %v179_v14 }
  0x18   :  { %384 = vmatprep.subr.mxu1 %v178_v15 }
  0x19   :  { %385 = vmatpush3.msra.mxu1 %v178_v15 }
  0x1a   :  { %386 = vmatprep.subr.mxu1 %v177_v16 }
  0x1b   :  { %387 = vmatpush3.msra.mxu1 %v177_v16 }
  0x1c   :  { %388 = vmatprep.subr.mxu1 %v176_v17 }
  0x1d   :  { %389 = vmatpush3.msra.mxu1 %v176_v17 }
  0x1e   :  { %390 = vmatprep.subr.mxu1 %v175_v18 }
  0x1f   :  { %391 = vmatpush3.msra.mxu1 %v175_v18 }
  0x20   :  { %392 = vmatprep.subr.mxu1 %v174_v19 }
  0x21   :  { %393 = vmatpush3.msra.mxu1 %v174_v19 }
  0x22   :  { %394 = vmatprep.subr.mxu1 %v173_v20 }
  0x23   :  { %395 = vmatpush3.msra.mxu1 %v173_v20 }
  0x24   :  { %396 = vmatprep.subr.mxu1 %v172_v21 }
  0x25   :  { %397 = vmatpush3.msra.mxu1 %v172_v21 }
  0xca   :  { %v365_v23 = vpop.f32.mrf.mxu0 }
  0xcb   :  { %v111_v24 = vadd.f32 %v365_v23, %v325_v22 }
  0xcc   :  { %v105_v25 = vpop.f32.mrf.mxu0 }
  0xcd   :  { %v117_v26 = vmul.f32 0.70710677, %v111_v24  ;;  %v106_v27 = vadd.f32 %v325_v22, %v105_v25  ;;  %v115_v18 = vmul.f32 0.5, %v111_v24  ;;  %v328_v22 = vld [vmem:[%s566_s3 + $0x1] ss:$0 sm:$0xff] }
  0xcf   :  { %v119_v28 = vand.u32 2147483647, %v117_v26  ;;  %v116_v29 = vmul.f32 0.70710677, %v106_v27  ;;  %vm163_vm1 = vcmp.ge.f32.partialorder %v117_v26, 0.0  ;;  %v114_v16 = vmul.f32 0.5, %v106_v27 }
  0xd1   :  { %v121_v30 = vmul.f32 0.3275911, %v119_v28  ;;  %v118_v31 = vand.u32 2147483647, %v116_v29  ;;  %v151_v35 = vsub.f32 0.0, %v119_v28  ;;  %vm162_vm2 = vcmp.ge.f32.partialorder %v116_v29, 0.0 }
  0xd3   :  { %v123_v32 = vadd.f32 1.0, %v121_v30  ;;  %v120_v33 = vmul.f32 0.3275911, %v118_v31  ;;  %v150_v38 = vsub.f32 0.0, %v118_v31  ;;  %v153_v41 = vmul.f32 %v151_v35, %v119_v28 }
  0xd5   :  { %404 = vrcp.f32 %v123_v32  ;;  %v122_v34 = vadd.f32 1.0, %v120_v33  ;;  %v152_v45 = vmul.f32 %v150_v38, %v118_v31  ;;  %v156_v46 = vmul.f32 1.442695, %v153_v41 }
  0xd7   :  { %406 = vrcp.f32 %v122_v34  ;;  %v154_v50 = vmul.f32 1.442695, %v152_v45  ;;  %v329_v45 = vld [vmem:[%s566_s3 + $0x2] ss:$0 sm:$0xff] }
  0xd8   :  { %408 = vpow2.f32 %v156_v46 }
  0xd9   :  { %410 = vpow2.f32 %v154_v50 }
  0xe2   :  { %v405_v36 = vpop.eup %404 }
  0xe3   :  { %v127_v37 = vmul.f32 %v405_v36, %v123_v32 }
  0xe4   :  { %v407_v39 = vpop.eup %406 }
  0xe5   :  { %v129_v40 = vsub.f32 2.0, %v127_v37  ;;  %v126_v42 = vmul.f32 %v407_v39, %v122_v34  ;;  %v409_v1 = vpop.eup %408 }
  0xe6   :  { %v411_v7 = vpop.eup %410 }
  0xe7   :  { %v131_v43 = vmul.f32 %v405_v36, %v129_v40  ;;  %v128_v44 = vsub.f32 2.0, %v126_v42 }
  0xe9   :  { %v133_v47 = vmul.f32 1.0614054, %v131_v43  ;;  %v130_v48 = vmul.f32 %v407_v39, %v128_v44 }
  0xeb   :  { %v135_v49 = vadd.f32 -1.4531521, %v133_v47  ;;  %v132_v51 = vmul.f32 1.0614054, %v130_v48  ;;  %v330_v47 = vld [vmem:[%s566_s3 + $0x3] ss:$0 sm:$0xff] }
  0xed   :  { %v137_v52 = vmul.f32 %v135_v49, %v131_v43  ;;  %v134_v53 = vadd.f32 -1.4531521, %v132_v51 }
  0xef   :  { %v139_v54 = vadd.f32 1.4214138, %v137_v52  ;;  %v136_v55 = vmul.f32 %v134_v53, %v130_v48 }
  0xf1   :  { %v141_v56 = vmul.f32 %v139_v54, %v131_v43  ;;  %v138_v57 = vadd.f32 1.4214138, %v136_v55 }
  0xf3   :  { %v143_v58 = vadd.f32 -0.28449672, %v141_v56  ;;  %v140_v59 = vmul.f32 %v138_v57, %v130_v48 }
  0xf5   :  { %v145_v60 = vmul.f32 %v143_v58, %v131_v43  ;;  %v142_v61 = vadd.f32 -0.28449672, %v140_v59 }
  0xf7   :  { %v147_v62 = vadd.f32 0.2548296, %v145_v60  ;;  %v144_v63 = vmul.f32 %v142_v61, %v130_v48 }
  0xf9   :  { %v149_v0 = vmul.f32 %v147_v62, %v131_v43  ;;  %v146_v3 = vadd.f32 0.2548296, %v144_v63 }
  0xfb   :  { %v159_v4 = vmul.f32 %v409_v1, %v149_v0  ;;  %v148_v6 = vmul.f32 %v146_v3, %v130_v48 }
  0xfd   :  { %v161_v8 = vsub.f32 1.0, %v159_v4  ;;  %v158_v9 = vmul.f32 %v411_v7, %v148_v6 }
  0xff   :  { %v165_v10 = vsub.f32 0.0, %v161_v8  ;;  %v160_v11 = vsub.f32 1.0, %v158_v9 }
 0x101   :  { %v167_v12 = vsel %vm163_vm1, %v161_v8, %v165_v10  ;;  %v164_v13 = vsub.f32 0.0, %v160_v11 }
 0x102   :  { %v169_v15 = vadd.f32 1.0, %v167_v12 }
 0x103   :  { %v166_v14 = vsel %vm162_vm2, %v160_v11, %v164_v13 }
 0x104   :  { %v168_v17 = vadd.f32 1.0, %v166_v14  ;;  %v171_v20 = vmul.f32 %v169_v15, %v115_v18 }
 0x106   :  { %v170_v19 = vmul.f32 %v168_v17, %v114_v16 }
 0x108   :  { %398 = vmatprep.mubr.f32.mxu1 %v170_v19 }
 0x109   :  { %399 = vmatmul.mubr.f32.vlgmr.msra.gmra.mxu1 %v171_v20 }
 0x1c9   :  { %v400_v21 = vpop.f32.mrf.mxu1 }
 0x1ca   :  { %v264_v25 = vadd.f32 %v400_v21, %v328_v22 }
 0x1cb   :  { %v258_v23 = vpop.f32.mrf.mxu1 }
 0x1cc   :  { %v259_v26 = vadd.f32 %v328_v22, %v258_v23  ;;  %v268_v27 = vadd.f32 %v264_v25, %v488_v5 }
 0x1ce   :  { %v267_v28 = vadd.f32 %v259_v26, %v475_v2  ;;  %v272_v24 = vsel %vm32_vm0, %v268_v27, 0.0 }
 0x1d0   :  { %v269_v29 = vsel %vm32_vm0, %v267_v28, 0.0 }
 0x1d1   :  { %270 = vadd.xlane.f32.xlu0 %v269_v29 }
 0x1d5   :  { %273 = vadd.xlane.f32.xlu0 %v272_v24 }
 0x25a   :  { %v271_v30 = vpop.xlane.xlu0 %270 }
 0x25b   :  { %v275_v31 = vmul.f32 0.03125, %v271_v30 }
 0x25d   :  { %v277_v32 = vsub.f32 %v267_v28, %v275_v31 }
 0x25e   :  { %v274_v33 = vpop.xlane.xlu0 %273 }
 0x25f   :  { %v276_v34 = vmul.f32 0.03125, %v274_v33  ;;  %v279_v35 = vmul.f32 %v277_v32, %v277_v32 }
 0x261   :  { %v278_v36 = vsub.f32 %v268_v27, %v276_v34  ;;  %v281_v37 = vsel %vm32_vm0, %v279_v35, 0.0 }
 0x262   :  { %282 = vadd.xlane.f32.xlu1 %v281_v37 }
 0x263   :  { %v280_v38 = vmul.f32 %v278_v36, %v278_v36 }
 0x265   :  { %v284_v2 = vsel %vm32_vm0, %v280_v38, 0.0 }
 0x266   :  { %285 = vadd.xlane.f32.xlu1 %v284_v2 }
 0x2eb   :  { %v283_v39 = vpop.xlane.xlu1 %282 }
 0x2ec   :  { %v287_v5 = vmul.f32 0.03125, %v283_v39 }
 0x2ee   :  { %v289_v40 = vadd.f32 1e-05, %v287_v5 }
 0x2ef   :  { %v286_v41 = vpop.xlane.xlu1 %285 }
 0x2f0   :  { %412 = vrsqrt.f32 %v289_v40  ;;  %v288_v42 = vmul.f32 0.03125, %v286_v41 }
 0x2f2   :  { %v290_v43 = vadd.f32 1e-05, %v288_v42 }
 0x2f4   :  { %414 = vrsqrt.f32 %v290_v43 }
 0x2fd   :  { %v413_v44 = vpop.eup %412 }
 0x2fe   :  { %v293_v46 = vmul.f32 %v413_v44, %v277_v32 }
 0x300   :  { %v299_v48 = vmul.f32 %v329_v45, %v293_v46 }
 0x301   :  { %v415_v49 = vpop.eup %414 }
 0x302   :  { %v294_v50 = vmul.f32 %v415_v49, %v278_v36  ;;  %v305_v51 = vadd.f32 %v330_v47, %v299_v48 }
 0x304   :  { %v300_v52 = vmul.f32 %v329_v45, %v294_v50  ;;  %307 = vst.msk [vmem:[#allocation2] sm:$0xff] %vm32_vm0, %v305_v51 }
 0x306   :  { %v306_v53 = vadd.f32 %v330_v47, %v300_v52 }
 0x308   :  { %308 = vst.msk [vmem:[#allocation2 + $0x8] sm:$0xff] %vm32_vm0, %v306_v53 }
 0x309   :  { %427 = shalt.err (!%p424_p4)
}
 0x30a   :  { %s439_s3 = smov 128   ;;  %s440_s13 = smov 8  }
 0x30b   :  { %320 = dma.vmem_to_hbm [thread:$0]  %s315_s11, 256, %s567_s4, [#allocation3], %s439_s3, %s439_s3, %s440_s13  }
 0x30c   :  { %436 = dma.done.wait [#allocation3], 256  }
 0x30d   :  { %437 = vsyncadd [#allocation3], 4294967040 }
 0x30e   :  { %324 = vsyncpa [#allocation3], 1 }

</bundles_post_ra>
